<compile_context>
chip_gen: v5e
topology: v5e:2x2
jax: 0.10.0
libtpu: 0.0.40
codegen_flags: <defaults>
</compile_context>

<pallas_src>
import functools

import jax
import jax.numpy as jnp
from jax import lax
from jax.experimental import pallas as pl
from jax.experimental.pallas import tpu as pltpu

# Small, self-consistent config (scaled-down ModelArgs).
VOCAB = 65       # vocab_size (matches the spec)
DIM = 128        # model dim (scaled down from 384; kept lane-dense = 128)
MAX_LEN = 32     # max positions (scaled down from 1024)
BATCH = 2
SEQ = 8

LANE = 128       # pad vocab (contraction K) to a full lane width


def embedding_kernel(ids_ref, tok_tbl_ref, pos_tbl_ref, o_ref, *, seq_len):
    """Single-invocation kernel.

    ids_ref:      (B*S, 1) int32, flattened token ids.
    tok_tbl_ref:  (K_pad, D) f32, vocab zero-padded to K_pad (lane-dense 128).
    pos_tbl_ref:  (MAX_LEN, D) f32.
    o_ref:        (B, S, D) f32 output.

    Token gather = one_hot(ids, K_pad) @ tok_table  (one MXU pass).
    Position add = static slice pos_table[:S] broadcast over batch (VPU add).
    """
    ids = ids_ref[...]                                     # (N, 1) int32
    n_tok = ids.shape[0]
    k_pad = tok_tbl_ref.shape[0]

    # --- token embedding gather: lane-dense one-hot @ table -> (N, D) ---
    vocab_iota = lax.broadcasted_iota(jnp.int32, (n_tok, k_pad), 1)
    tok_oh = (ids == vocab_iota).astype(jnp.float32)       # (N, K_pad)
    tok = jnp.dot(tok_oh, tok_tbl_ref[...],
                  preferred_element_type=jnp.float32)      # (N, D)

    # --- positional embedding: static slice + broadcast add over batch ---
    b, _, d = o_ref.shape
    tok3 = tok.reshape(b, seq_len, d)                      # free view (S % 8 == 0)
    pos = pos_tbl_ref[:seq_len, :]                         # (S, D), static slice
    o_ref[...] = tok3 + pos[None, :, :]


def embedding_forward(token_ids, tok_table, pos_table):
    """token_ids: (B, S) int; tok_table: (V, D); pos_table: (MAX_LEN, D)."""
    B, S = token_ids.shape
    V, D = tok_table.shape
    N = B * S
    ids2d = token_ids.reshape(N, 1).astype(jnp.int32)

    # Zero-pad the vocab (contraction) axis to a full 128-lane tile.
    k_pad = max(LANE, pl.cdiv(V, LANE) * LANE)
    tok_table_p = jnp.pad(tok_table.astype(jnp.float32),
                          ((0, k_pad - V), (0, 0)))

    kernel = functools.partial(embedding_kernel, seq_len=S)
    vmem = pl.BlockSpec(memory_space=pltpu.MemorySpace.VMEM)

    out = pl.pallas_call(
        kernel,
        out_shape=jax.ShapeDtypeStruct((B, S, D), jnp.float32),
        in_specs=[vmem, vmem, vmem],
        out_specs=pl.BlockSpec(memory_space=pltpu.MemorySpace.VMEM),
    )(ids2d, tok_table_p, pos_table.astype(jnp.float32))
    return out


def reference_forward(token_ids, tok_table, pos_table):
    """Pure-JAX reference mirroring the PyTorch module."""
    S = token_ids.shape[1]
    return tok_table[token_ids] + pos_table[:S][None, :, :]


if __name__ == "__main__":
    key = jax.random.PRNGKey(0)
    k_ids, k_tok, k_pos = jax.random.split(key, 3)

    token_ids = jax.random.randint(k_ids, (BATCH, SEQ), 0, VOCAB, dtype=jnp.int32)
    tok_table = 0.02 * jax.random.normal(k_tok, (VOCAB, DIM), jnp.float32)
    pos_table = 0.02 * jax.random.normal(k_pos, (MAX_LEN, DIM), jnp.float32)

    out = embedding_forward(token_ids, tok_table, pos_table)
    out = jax.block_until_ready(out)

    ref = reference_forward(token_ids, tok_table, pos_table)
    assert out.shape == (BATCH, SEQ, DIM)
    max_err = float(jnp.max(jnp.abs(out - ref)))
    assert max_err < 2e-3, f"mismatch vs reference: {max_err}"

    print("KERNEL_OK")
</pallas_src>

<mosaic_0001>
module attributes {stable_mosaic.version = 11 : i64} {
  func.func @embedding_kernel(%arg0: memref<16x1xi32, #tpu.memory_space<vmem>>, %arg1: memref<128x128xf32, #tpu.memory_space<vmem>>, %arg2: memref<32x128xf32, #tpu.memory_space<vmem>>, %arg3: memref<2x8x128xf32, #tpu.memory_space<vmem>>) attributes {dimension_semantics = [], scalar_prefetch = 0 : i64, scratch_operands = 0 : i64, tpu.core_type = #tpu.core_type<tc>} {
    %c0 = arith.constant 0 : index
    %c0_0 = arith.constant 0 : index
    %0 = vector.load %arg0[%c0, %c0_0] : memref<16x1xi32, #tpu.memory_space<vmem>>, vector<16x1xi32>
    %1 = tpu.iota {dimensions = array<i32: 1>} : vector<16x128xi32>
    %2 = vector.broadcast %0 : vector<16x1xi32> to vector<16x128xi32>
    %3 = arith.cmpi eq, %2, %1 : vector<16x128xi32>
    %4 = arith.extui %3 : vector<16x128xi1> to vector<16x128xi32>
    %5 = arith.sitofp %4 : vector<16x128xi32> to vector<16x128xf32>
    %c0_1 = arith.constant 0 : index
    %c0_2 = arith.constant 0 : index
    %6 = vector.load %arg1[%c0_1, %c0_2] : memref<128x128xf32, #tpu.memory_space<vmem>>, vector<128x128xf32>
    %cst = arith.constant dense<0.000000e+00> : vector<16x128xf32>
    %7 = tpu.matmul %5, %6, %cst {dimension_numbers = #tpu.dot_dimension_numbers<[1], [0], [0], [1], [0, 0, 1, 1], [], []>} : vector<16x128xf32>, vector<128x128xf32>, vector<16x128xf32> -> vector<16x128xf32>
    %8 = vector.shape_cast %7 : vector<16x128xf32> to vector<2x8x128xf32>
    %c0_3 = arith.constant 0 : index
    %c0_4 = arith.constant 0 : index
    %9 = vector.load %arg2[%c0_3, %c0_4] : memref<32x128xf32, #tpu.memory_space<vmem>>, vector<8x128xf32>
    %10 = vector.shape_cast %9 : vector<8x128xf32> to vector<1x8x128xf32>
    %11 = vector.broadcast %10 : vector<1x8x128xf32> to vector<2x8x128xf32>
    %12 = arith.addf %8, %11 : vector<2x8x128xf32>
    %c0_5 = arith.constant 0 : index
    %c0_6 = arith.constant 0 : index
    %c0_7 = arith.constant 0 : index
    %13 = vector.load %arg3[%c0_5, %c0_6, %c0_7] : memref<2x8x128xf32, #tpu.memory_space<vmem>>, vector<2x8x128xf32>
    tpu.vector_store %arg3[%c0_5, %c0_6, %c0_7], %12 {strides = array<i32>} : memref<2x8x128xf32, #tpu.memory_space<vmem>>, vector<2x8x128xf32>,
    return
  }
}

</mosaic_0001>

<bundles_post_ra>
// kernel: tpu_custom_call.1
= control target key start
LH: loop header
LB: loop body
LE: loop exit
PB: predicated region body
PF: predicated region fallthrough
CT: control target
= control target key end

     0   :  { %8 = vsyncpa [#allocation3], 0  ;;  %s284_s0 = inlined_call_operand.vmem [shape: s32[16,1], index: 0, kind: input, shape index: {}]   ;;  %s285_s1 = inlined_call_operand.hbm [shape: f32[128,128], index: 1, kind: input, shape index: {}]   ;;  %s286_s2 = inlined_call_operand.hbm [shape: f32[32,128], index: 2, kind: input, shape index: {}]   ;;  %s287_s3 = inlined_call_operand.hbm [shape: f32[2,8,128], index: 3, kind: output, shape index: {}]  }
   0x1   :  { %9 = vsyncpa [#allocation6], 0 }
   0x2   :  { %10 = vsyncpa [#allocation4], 0  ;;  %s17_s14 = sshll.u32 %s285_s1, 4  ;;  %s233_s15 = smov [#allocation2]   ;;  %s18_s14 = int_to_ptr.hbm [resolvable:$true] %s17_s14 }
   0x3   :  { %s19_s16 = sshll.u32 %s233_s15, 4  ;;  %s30_s19 = sshll.u32 %s286_s2, 4  ;;  %s20_s16 = int_to_ptr.vmem [resolvable:$true] %s19_s16  ;;  %s31_s19 = int_to_ptr.hbm [resolvable:$true] %s30_s19 }
   0x4   :  { %s234_s20 = smov 128   ;;  %s235_s21 = smov 8  }
   0x5   :  { %25 = dma.hbm_to_vmem [thread:$0]  %s18_s14, 2048, %s20_s16, [#allocation3], %s234_s20, %s234_s20, %s235_s21  }
   0x6   :  { %s236_s22 = smov [#allocation5]  }
   0x7   :  { %s32_s23 = sshll.u32 %s236_s22, 4  ;;  %s33_s23 = int_to_ptr.vmem [resolvable:$true] %s32_s23 }
   0x8   :  { %38 = dma.hbm_to_vmem [thread:$0]  %s31_s19, 512, %s33_s23, [#allocation6], %s234_s20, %s234_s20, %s235_s21  }
   0x9   :  { %227 = dma.done.wait [#allocation3], 2048  }
   0xa   :  { %228 = vsyncadd [#allocation3], 4294965248 }
   0xb   :  { %229 = dma.done.wait [#allocation6], 512  }
   0xc   :  { %230 = vsyncadd [#allocation6], 4294966784  ;;  %v237_v0 = vmov 0   ;;  %v47_v1 = vld [vmem:[%s284_s0] sm:$0xff]  ;;  %v78_v2 = vld [vmem:[#allocation2 + $0x78] sm:$0xff]  ;;  %v49_v19 = vlaneseq  ;;  %v238_v22 = vmov 1.0  }
   0xd   :  { %154 = vset.pattern.permute.xlu0 %v237_v0  ;;  %79 = vmatpush.msra.mxu0 %v78_v2  ;;  %v77_v3 = vld [vmem:[#allocation2 + $0x70] sm:$0xff]  ;;  %v76_v4 = vld [vmem:[#allocation2 + $0x68] sm:$0xff]  ;;  %v75_v5 = vld [vmem:[#allocation2 + $0x60] sm:$0xff]  ;;  %s113_s29 = sshll.u32 %s287_s3, 4  ;;  %s114_s29 = int_to_ptr.hbm [resolvable:$true] %s113_s29 }
   0xe   :  { %52 = vperm.xlu0 %154, %v47_v1   ;;  %131 = vmatpush.msra.mxu1 %v78_v2  ;;  %v48_v6 = vld [vmem:[%s284_s0 + $0x8] sm:$0xff]  ;;  %v74_v7 = vld [vmem:[#allocation2 + $0x58] sm:$0xff]  ;;  %v73_v8 = vld [vmem:[#allocation2 + $0x50] sm:$0xff]  ;;  %v50_v20 = vand.u32 127, %v49_v19  ;;  %s239_s0 = smov [#allocation7]  }
   0xf   :  { %80 = vmatpush.msra.mxu0 %v77_v3  ;;  %v72_v9 = vld [vmem:[#allocation2 + $0x48] sm:$0xff]  ;;  %v71_v10 = vld [vmem:[#allocation2 + $0x40] sm:$0xff]  ;;  %v70_v11 = vld [vmem:[#allocation2 + $0x38] sm:$0xff]  ;;  %s111_s26 = sshll.u32 %s239_s0, 4  ;;  %s112_s26 = int_to_ptr.vmem [resolvable:$true] %s111_s26 }
  0x10   :  { %132 = vmatpush.msra.mxu1 %v77_v3  ;;  %v69_v12 = vld [vmem:[#allocation2 + $0x30] sm:$0xff]  ;;  %v68_v13 = vld [vmem:[#allocation2 + $0x28] sm:$0xff]  ;;  %v67_v14 = vld [vmem:[#allocation2 + $0x20] sm:$0xff] }
  0x11   :  { %81 = vmatpush.msra.mxu0 %v76_v4  ;;  %v66_v15 = vld [vmem:[#allocation2 + $0x18] sm:$0xff]  ;;  %v65_v16 = vld [vmem:[#allocation2 + $0x10] sm:$0xff]  ;;  %v64_v17 = vld [vmem:[#allocation2 + $0x8] sm:$0xff] }
  0x12   :  { %133 = vmatpush.msra.mxu1 %v76_v4  ;;  %v63_v18 = vld [vmem:[#allocation2] sm:$0xff] }
  0x13   :  { %82 = vmatpush.msra.mxu0 %v75_v5  ;;  %v102_v24 = vld [vmem:[#allocation5] sm:$0xff] }
  0x14   :  { %134 = vmatpush.msra.mxu1 %v75_v5 }
  0x15   :  { %83 = vmatpush.msra.mxu0 %v74_v7 }
  0x16   :  { %55 = vperm.xlu0 %154, %v48_v6   ;;  %135 = vmatpush.msra.mxu1 %v74_v7 }
  0x17   :  { %84 = vmatpush.msra.mxu0 %v73_v8 }
  0x18   :  { %136 = vmatpush.msra.mxu1 %v73_v8 }
  0x19   :  { %85 = vmatpush.msra.mxu0 %v72_v9 }
  0x1a   :  { %137 = vmatpush.msra.mxu1 %v72_v9 }
  0x1b   :  { %86 = vmatpush.msra.mxu0 %v71_v10 }
  0x1c   :  { %138 = vmatpush.msra.mxu1 %v71_v10 }
  0x1d   :  { %87 = vmatpush.msra.mxu0 %v70_v11 }
  0x1e   :  { %139 = vmatpush.msra.mxu1 %v70_v11 }
  0x1f   :  { %88 = vmatpush.msra.mxu0 %v69_v12 }
  0x20   :  { %140 = vmatpush.msra.mxu1 %v69_v12 }
  0x21   :  { %89 = vmatpush.msra.mxu0 %v68_v13 }
  0x22   :  { %141 = vmatpush.msra.mxu1 %v68_v13 }
  0x23   :  { %90 = vmatpush.msra.mxu0 %v67_v14 }
  0x24   :  { %142 = vmatpush.msra.mxu1 %v67_v14 }
  0x25   :  { %91 = vmatpush.msra.mxu0 %v66_v15 }
  0x26   :  { %143 = vmatpush.msra.mxu1 %v66_v15 }
  0x27   :  { %92 = vmatpush.msra.mxu0 %v65_v16 }
  0x28   :  { %144 = vmatpush.msra.mxu1 %v65_v16 }
  0x29   :  { %93 = vmatpush.msra.mxu0 %v64_v17 }
  0x2a   :  { %145 = vmatpush.msra.mxu1 %v64_v17 }
  0x2b   :  { %94 = vmatpush.msra.mxu0 %v63_v18 }
  0x2c   :  { %146 = vmatpush.msra.mxu1 %v63_v18 }
  0x80   :  { %v53_v21 = vpop.permute.xlu0 %52 }
  0x81   :  { %vm57_vm0 = vcmp.eq.s32.totalorder %v53_v21, %v50_v20 }
  0x82   :  { %129 = vmatmul.msk.f32.vlgmr.msra.gmra.mxu0 %vm57_vm0, %v238_v22 }
  0x88   :  { %v56_v23 = vpop.permute.xlu0 %55 }
  0x89   :  { %vm58_vm1 = vcmp.eq.s32.totalorder %v56_v23, %v50_v20 }
  0x8a   :  { %130 = vmatmul.msk.f32.vlgmr.msra.gmra.mxu1 %vm58_vm1, %v238_v22 }
  0xff   :  { %v96_v25 = vpop.f32.mrf.mxu0 }
 0x100   :  { %v103_v26 = vadd.f32 %v102_v24, %v96_v25 }
 0x102   :  { %105 = vst [vmem:[#allocation7] sm:$0xff] %v103_v26 }
 0x107   :  { %v99_v27 = vpop.f32.mrf.mxu1 }
 0x108   :  { %v104_v28 = vadd.f32 %v102_v24, %v99_v27 }
 0x10a   :  { %106 = vst [vmem:[#allocation7 + $0x8] sm:$0xff] %v104_v28 }
 0x10b   :  { %119 = dma.vmem_to_hbm [thread:$0]  %s112_s26, 256, %s114_s29, [#allocation4], %s234_s20, %s234_s20, %s235_s21  }
 0x10c   :  { %231 = dma.done.wait [#allocation4], 256  }
 0x10d   :  { %232 = vsyncadd [#allocation4], 4294967040 }
 0x10e   :  { %124 = vsyncpa [#allocation3], 1 }
 0x10f   :  { %125 = vsyncpa [#allocation6], 1 }
 0x110   :  { %126 = vsyncpa [#allocation4], 1 }

</bundles_post_ra>
